<compile_context>
chip_gen: v7x
topology: tpu7x:2x2x1
jax: 0.10.0
libtpu: 0.0.40
codegen_flags: <defaults>
</compile_context>

<pallas_src>
import jax
import jax.numpy as jnp
from jax import lax
from jax.experimental import pallas as pl
from jax.experimental.pallas import tpu as pltpu


# ---------------------------------------------------------------------------
# Kernel
# ---------------------------------------------------------------------------
def mlp_kernel(x_ref, w1_ref, b1_ref, w2_ref, b2_ref, w3t_ref, b3_ref, o_ref):
    # x arrives as f32 straight from HBM; cast to bf16 in-kernel (VPU) so the
    # dominant HBM stream is 4 B/elem with no separate convert/pad pass.
    x = x_ref[...].astype(jnp.bfloat16)                              # (TB, D)

    # Layer 1: Linear(D, 64) + ReLU  (MXU, f32 accumulation; elementwise in f32)
    h1 = jnp.dot(x, w1_ref[...], preferred_element_type=jnp.float32) + b1_ref[...]
    h1 = jnp.maximum(h1, 0.0)

    # Layer 2: Linear(64, 32) + ReLU
    h2 = jnp.dot(h1.astype(jnp.bfloat16), w2_ref[...],
                 preferred_element_type=jnp.float32) + b2_ref[...]
    h2 = jnp.maximum(h2, 0.0)

    # Layer 3: Linear(32, 1), computed as (1,32) x (TB,32)^T -> (1, TB) so the result
    # is lane-dense (batch on the 128-lane axis) and the output store is unmasked.
    # TODO(synk): confirm via bundle dump that any implicit (TB,32) transpose stays on
    # the otherwise-idle XLU at large tiles; fall back to VPU mul + lane-reduce if not.
    z = lax.dot_general(
        w3t_ref[...], h2.astype(jnp.bfloat16),
        dimension_numbers=(((1,), (1,)), ((), ())),
        preferred_element_type=jnp.float32,
    ) + b3_ref[...]                                                  # (1, TB) f32

    # Sigmoid: exp and reciprocal both land on the EUP slot.
    e = jnp.exp(-z)
    o_ref[0] = pl.reciprocal(1.0 + e, approx=True)                   # block is (1,1,TB)


# ---------------------------------------------------------------------------
# Tiling / VMEM heuristics
# ---------------------------------------------------------------------------
def _round_up(n, m):
    return ((n + m - 1) // m) * m


def _vmem_bytes(tile, D):
    """Rough per-call VMEM working set (double-buffered I/O + activations + weights)."""
    x_io = 2 * tile * D * 4 + 2 * tile * 4                 # x (f32) + out (f32), 2 bufs
    interm = tile * (64 + 32) * (4 + 2) + tile * 2 * 4     # f32 + bf16 activations, z row
    weights = 2 * ((D * 64 + 64 * 32 + 32) * 2 + (64 + 32 + 1) * 4)
    return x_io + interm + weights


def _pick_tile(B, D):
    try:
        vmem_cap = int(pltpu.get_tpu_info().vmem_capacity_bytes)
    except Exception:
        vmem_cap = 64 << 20  # conservative (v7x per-core) default

    # ~5/8 of physical VMEM: ~80 MiB on v5e/v6e (128 MiB), ~40 MiB on v7x (64 MiB).
    budget = max((vmem_cap * 5) // 8, 32 << 20)

    # Target ~2 MiB of f32 x per grid step so the DMA dwarfs the ~0.35 us step overhead.
    tile = max(1024, min(8192, (2 << 20) // (D * 4)))
    tile = _round_up(tile, 256)
    # Don't exceed the (rounded-up) batch.
    tile = min(tile, _round_up(B, 256))
    # Keep >= 2 grid steps when the batch allows it so a 2-TC chip (v7x) can shard
    # the 'parallel' grid axis across both TensorCores (negligible cost on 1-TC chips).
    if B > 2 * 256 and pl.cdiv(B, tile) < 2:
        tile = _round_up(pl.cdiv(B, 2), 256)
    # Shrink until the double-buffered working set fits the per-generation budget.
    while _vmem_bytes(tile, D) > budget and tile > 256:
        tile = max(256, _round_up(tile // 2, 256))
    return tile, budget


# ---------------------------------------------------------------------------
# Wrapper
# ---------------------------------------------------------------------------
def simple_mlp_forward(x, params):
    """Fused MLP forward. x: (B, D) float32, params: dict of w1,b1,w2,b2,w3,b3.

    Returns (B, 1) float32 = sigmoid(relu(relu(x@W1+b1)@W2+b2)@W3+b3).
    """
    B, D = x.shape
    tile, budget = _pick_tile(B, D)
    num_tiles = pl.cdiv(B, tile)

    w1 = params["w1"].astype(jnp.bfloat16)                        # (D, 64)
    w2 = params["w2"].astype(jnp.bfloat16)                        # (64, 32)
    w3t = params["w3"].reshape(1, -1).astype(jnp.bfloat16)        # (1, 32)
    b1 = params["b1"].astype(jnp.float32)                         # (1, 64)
    b2 = params["b2"].astype(jnp.float32)                         # (1, 32)
    b3 = params["b3"].astype(jnp.float32)                         # (1, 1)

    # Cost hint for XLA scheduling around the custom call (x is read as f32 now).
    flops = 2 * B * (D * 64 + 64 * 32 + 32)
    bytes_accessed = (B * D * 4
                      + (w1.size + w2.size + w3t.size) * 2
                      + (b1.size + b2.size + b3.size) * 4
                      + num_tiles * tile * 4)

    est = _vmem_bytes(tile, D)
    vmem_limit = int(min(budget, max(est + (16 << 20), 32 << 20)))

    out = pl.pallas_call(
        mlp_kernel,
        out_shape=jax.ShapeDtypeStruct((num_tiles, 1, tile), jnp.float32),
        grid_spec=pltpu.PrefetchScalarGridSpec(
            num_scalar_prefetch=0,
            grid=(num_tiles,),
            in_specs=[
                pl.BlockSpec((tile, D), lambda i: (i, 0)),        # x tile (f32)
                pl.BlockSpec(w1.shape, lambda i: (0, 0)),         # W1 (full, constant)
                pl.BlockSpec(b1.shape, lambda i: (0, 0)),         # b1
                pl.BlockSpec(w2.shape, lambda i: (0, 0)),         # W2
                pl.BlockSpec(b2.shape, lambda i: (0, 0)),         # b2
                pl.BlockSpec(w3t.shape, lambda i: (0, 0)),        # W3 row
                pl.BlockSpec(b3.shape, lambda i: (0, 0)),         # b3
            ],
            out_specs=pl.BlockSpec((1, 1, tile), lambda i: (i, 0, 0)),
        ),
        compiler_params=pltpu.CompilerParams(
            dimension_semantics=("parallel",),   # independent batch tiles (megacore)
            vmem_limit_bytes=vmem_limit,
        ),
        cost_estimate=pl.CostEstimate(
            flops=flops, transcendentals=2 * num_tiles * tile,
            bytes_accessed=bytes_accessed),
    )(x, w1, b1, w2, b2, w3t, b3)

    # Layout plumbing only: (num_tiles, 1, tile) lane-dense slab -> (B, 1).
    # Rows >= B in the last (partial) tile are garbage and are sliced off here.
    return out.reshape(-1)[:B].reshape(B, 1)


# ---------------------------------------------------------------------------
# Init + pure-JAX reference + self-test
# ---------------------------------------------------------------------------
def init_params(key, input_dim):
    """Deterministic init matching nn.Linear shapes (weights stored as (in, out))."""
    k1, k2, k3, k4, k5, k6 = jax.random.split(key, 6)

    def uniform(k, shape, fan_in):
        bound = 1.0 / jnp.sqrt(fan_in)
        return jax.random.uniform(k, shape, jnp.float32, -bound, bound)

    return {
        "w1": uniform(k1, (input_dim, 64), input_dim),
        "b1": uniform(k2, (1, 64), input_dim),
        "w2": uniform(k3, (64, 32), 64),
        "b2": uniform(k4, (1, 32), 64),
        "w3": uniform(k5, (32, 1), 32),
        "b3": uniform(k6, (1, 1), 32),
    }


def reference_forward(x, p):
    """Pure-JAX reference mirroring the kernel's bf16 operands / f32 accumulation."""
    bf16, f32 = jnp.bfloat16, jnp.float32
    h1 = jnp.maximum(jnp.dot(x.astype(bf16), p["w1"].astype(bf16),
                             preferred_element_type=f32) + p["b1"], 0.0)
    h2 = jnp.maximum(jnp.dot(h1.astype(bf16), p["w2"].astype(bf16),
                             preferred_element_type=f32) + p["b2"], 0.0)
    z = jnp.dot(h2.astype(bf16), p["w3"].astype(bf16),
                preferred_element_type=f32) + p["b3"]
    return 1.0 / (1.0 + jnp.exp(-z))


if __name__ == "__main__":
    key = jax.random.PRNGKey(0)
    kx, kp = jax.random.split(key)

    batch, input_dim = 32, 16
    x = jax.random.normal(kx, (batch, input_dim), jnp.float32)
    params = init_params(kp, input_dim)

    out = jax.block_until_ready(simple_mlp_forward(x, params))
    ref = reference_forward(x, params)

    assert out.shape == (batch, 1)
    assert jnp.allclose(out, ref, atol=2e-3, rtol=0.0), "mismatch vs pure-JAX reference"

    print("KERNEL_OK")
</pallas_src>

<mosaic_0001>
module attributes {stable_mosaic.version = 11 : i64} {
  func.func @mlp_kernel(%arg0: i32, %arg1: memref<256x16xf32, #tpu.memory_space<vmem>>, %arg2: memref<16x64xbf16, #tpu.memory_space<vmem>>, %arg3: memref<1x64xf32, #tpu.memory_space<vmem>>, %arg4: memref<64x32xbf16, #tpu.memory_space<vmem>>, %arg5: memref<1x32xf32, #tpu.memory_space<vmem>>, %arg6: memref<1x32xbf16, #tpu.memory_space<vmem>>, %arg7: memref<1x1xf32, #tpu.memory_space<vmem>>, %arg8: memref<1x1x256xf32, #tpu.memory_space<vmem>>) attributes {dimension_semantics = [#tpu.dimension_semantics<parallel>], iteration_bounds = array<i64: 1>, scalar_prefetch = 0 : i64, scratch_operands = 0 : i64, tpu.core_type = #tpu.core_type<tc>, window_params = [{transform_indices = @transform_0, window_bounds = array<i64: 256, 16>}, {pipeline_mode = #tpu.pipeline_mode<synchronous>, transform_indices = @transform_1, window_bounds = array<i64: 16, 64>}, {pipeline_mode = #tpu.pipeline_mode<synchronous>, transform_indices = @transform_2, window_bounds = array<i64: 1, 64>}, {pipeline_mode = #tpu.pipeline_mode<synchronous>, transform_indices = @transform_3, window_bounds = array<i64: 64, 32>}, {pipeline_mode = #tpu.pipeline_mode<synchronous>, transform_indices = @transform_4, window_bounds = array<i64: 1, 32>}, {pipeline_mode = #tpu.pipeline_mode<synchronous>, transform_indices = @transform_5, window_bounds = array<i64: 1, 32>}, {pipeline_mode = #tpu.pipeline_mode<synchronous>, transform_indices = @transform_6, window_bounds = array<i64: 1, 1>}, {transform_indices = @transform_7, window_bounds = array<i64: 1, 1, 256>}]} {
    %c0 = arith.constant 0 : index
    %c0_0 = arith.constant 0 : index
    %0 = vector.load %arg1[%c0, %c0_0] : memref<256x16xf32, #tpu.memory_space<vmem>>, vector<256x16xf32>
    %1 = arith.truncf %0 : vector<256x16xf32> to vector<256x16xbf16>
    %c0_1 = arith.constant 0 : index
    %c0_2 = arith.constant 0 : index
    %2 = vector.load %arg2[%c0_1, %c0_2] : memref<16x64xbf16, #tpu.memory_space<vmem>>, vector<16x64xbf16>
    %cst = arith.constant dense<0.000000e+00> : vector<256x64xf32>
    %3 = tpu.matmul %1, %2, %cst {dimension_numbers = #tpu.dot_dimension_numbers<[1], [0], [0], [1], [0, 0, 1, 1], [], []>} : vector<256x16xbf16>, vector<16x64xbf16>, vector<256x64xf32> -> vector<256x64xf32>
    %c0_3 = arith.constant 0 : index
    %c0_4 = arith.constant 0 : index
    %4 = vector.load %arg3[%c0_3, %c0_4] : memref<1x64xf32, #tpu.memory_space<vmem>>, vector<1x64xf32>
    %5 = vector.broadcast %4 : vector<1x64xf32> to vector<256x64xf32>
    %6 = arith.addf %3, %5 : vector<256x64xf32>
    %cst_5 = arith.constant 0.000000e+00 : f32
    %7 = vector.broadcast %cst_5 : f32 to vector<256x64xf32>
    %8 = arith.maximumf %6, %7 : vector<256x64xf32>
    %9 = arith.truncf %8 : vector<256x64xf32> to vector<256x64xbf16>
    %c0_6 = arith.constant 0 : index
    %c0_7 = arith.constant 0 : index
    %10 = vector.load %arg4[%c0_6, %c0_7] : memref<64x32xbf16, #tpu.memory_space<vmem>>, vector<64x32xbf16>
    %cst_8 = arith.constant dense<0.000000e+00> : vector<256x32xf32>
    %11 = tpu.matmul %9, %10, %cst_8 {dimension_numbers = #tpu.dot_dimension_numbers<[1], [0], [0], [1], [0, 0, 1, 1], [], []>} : vector<256x64xbf16>, vector<64x32xbf16>, vector<256x32xf32> -> vector<256x32xf32>
    %c0_9 = arith.constant 0 : index
    %c0_10 = arith.constant 0 : index
    %12 = vector.load %arg5[%c0_9, %c0_10] : memref<1x32xf32, #tpu.memory_space<vmem>>, vector<1x32xf32>
    %13 = vector.broadcast %12 : vector<1x32xf32> to vector<256x32xf32>
    %14 = arith.addf %11, %13 : vector<256x32xf32>
    %cst_11 = arith.constant 0.000000e+00 : f32
    %15 = vector.broadcast %cst_11 : f32 to vector<256x32xf32>
    %16 = arith.maximumf %14, %15 : vector<256x32xf32>
    %c0_12 = arith.constant 0 : index
    %c0_13 = arith.constant 0 : index
    %17 = vector.load %arg6[%c0_12, %c0_13] : memref<1x32xbf16, #tpu.memory_space<vmem>>, vector<1x32xbf16>
    %18 = arith.truncf %16 : vector<256x32xf32> to vector<256x32xbf16>
    %cst_14 = arith.constant dense<0.000000e+00> : vector<1x256xf32>
    %19 = tpu.matmul %17, %18, %cst_14 {dimension_numbers = #tpu.dot_dimension_numbers<[1], [1], [0], [0], [0, 0, 1, 0], [], []>} : vector<1x32xbf16>, vector<256x32xbf16>, vector<1x256xf32> -> vector<1x256xf32>
    %c0_15 = arith.constant 0 : index
    %c0_16 = arith.constant 0 : index
    %20 = vector.load %arg7[%c0_15, %c0_16] : memref<1x1xf32, #tpu.memory_space<vmem>>, vector<1x1xf32>
    %21 = vector.broadcast %20 : vector<1x1xf32> to vector<1x256xf32>
    %22 = arith.addf %19, %21 : vector<1x256xf32>
    %cst_17 = arith.constant 0.000000e+00 : f32
    %23 = vector.broadcast %cst_17 : f32 to vector<1x256xf32>
    %24 = arith.subf %23, %22 : vector<1x256xf32>
    %25 = math.exp %24 : vector<1x256xf32>
    %cst_18 = arith.constant 1.000000e+00 : f32
    %26 = vector.broadcast %cst_18 : f32 to vector<1x256xf32>
    %27 = arith.addf %26, %25 : vector<1x256xf32>
    %28 = tpu.reciprocal %27 {approx = true} : vector<1x256xf32> -> vector<1x256xf32>
    %c0_19 = arith.constant 0 : index
    %c0_20 = arith.constant 0 : index
    %c0_21 = arith.constant 0 : index
    %29 = vector.load %arg8[%c0_19, %c0_20, %c0_21] : memref<1x1x256xf32, #tpu.memory_space<vmem>>, vector<1x1x256xf32>
    %30 = vector.shape_cast %29 : vector<1x1x256xf32> to vector<1x256xf32>
    %31 = vector.shape_cast %28 : vector<1x256xf32> to vector<1x1x256xf32>
    tpu.vector_store %arg8[%c0_19, %c0_20, %c0_21], %31 {strides = array<i32>} : memref<1x1x256xf32, #tpu.memory_space<vmem>>, vector<1x1x256xf32>,
    return
  }
  func.func @transform_0(%arg0: i32) -> (i32, i32) {
    %c0_i32 = arith.constant 0 : i32
    %c0_i32_0 = arith.constant 0 : i32
    return %arg0, %c0_i32 : i32, i32
  }
  func.func @transform_1(%arg0: i32) -> (i32, i32) {
    %c0_i32 = arith.constant 0 : i32
    %c0_i32_0 = arith.constant 0 : i32
    %c0_i32_1 = arith.constant 0 : i32
    return %c0_i32, %c0_i32_0 : i32, i32
  }
  func.func @transform_2(%arg0: i32) -> (i32, i32) {
    %c0_i32 = arith.constant 0 : i32
    %c0_i32_0 = arith.constant 0 : i32
    %c0_i32_1 = arith.constant 0 : i32
    return %c0_i32, %c0_i32_0 : i32, i32
  }
  func.func @transform_3(%arg0: i32) -> (i32, i32) {
    %c0_i32 = arith.constant 0 : i32
    %c0_i32_0 = arith.constant 0 : i32
    %c0_i32_1 = arith.constant 0 : i32
    return %c0_i32, %c0_i32_0 : i32, i32
  }
  func.func @transform_4(%arg0: i32) -> (i32, i32) {
    %c0_i32 = arith.constant 0 : i32
    %c0_i32_0 = arith.constant 0 : i32
    %c0_i32_1 = arith.constant 0 : i32
    return %c0_i32, %c0_i32_0 : i32, i32
  }
  func.func @transform_5(%arg0: i32) -> (i32, i32) {
    %c0_i32 = arith.constant 0 : i32
    %c0_i32_0 = arith.constant 0 : i32
    %c0_i32_1 = arith.constant 0 : i32
    return %c0_i32, %c0_i32_0 : i32, i32
  }
  func.func @transform_6(%arg0: i32) -> (i32, i32) {
    %c0_i32 = arith.constant 0 : i32
    %c0_i32_0 = arith.constant 0 : i32
    %c0_i32_1 = arith.constant 0 : i32
    return %c0_i32, %c0_i32_0 : i32, i32
  }
  func.func @transform_7(%arg0: i32) -> (i32, i32, i32) {
    %c0_i32 = arith.constant 0 : i32
    %c0_i32_0 = arith.constant 0 : i32
    %c0_i32_1 = arith.constant 0 : i32
    return %arg0, %c0_i32, %c0_i32_0 : i32, i32, i32
  }
}

</mosaic_0001>

<bundles_post_ra>
// kernel: tpu_custom_call.1
= control target key start
LH: loop header
LB: loop body
LE: loop exit
PB: predicated region body
PF: predicated region fallthrough
CT: control target
= control target key end

     0   :  { %s1341_s0 = inlined_call_operand.vmem [shape: f32[32,16], index: 0, kind: input, shape index: {}]   ;;  %s1342_s1 = inlined_call_operand.vmem [shape: bf16[16,64], index: 1, kind: input, shape index: {}]   ;;  %s1343_s2 = inlined_call_operand.vmem [shape: f32[1,64], index: 2, kind: input, shape index: {}]   ;;  %s1344_s3 = inlined_call_operand.vmem [shape: bf16[64,32], index: 3, kind: input, shape index: {}]   ;;  %s1345_s4 = inlined_call_operand.vmem [shape: f32[1,32], index: 4, kind: input, shape index: {}]   ;;  %s1346_s5 = inlined_call_operand.vmem [shape: bf16[1,32], index: 5, kind: input, shape index: {}]   ;;  %s1347_s6 = inlined_call_operand.<no memory space> [shape: f32[1,1], index: 6, kind: input, shape index: {}]   ;;  %s1348_s7 = inlined_call_operand.hbm [shape: f32[1,1,256], index: 7, kind: output, shape index: {}]  }
   0x1   :  { %v12_v0 = vstv %s1347_s6 }
   0x2   :  { %13 = vst [vmem:[#allocation2] sm:$0x1] %v12_v0 }
   0x3   :  { %v980_v1 = vld [vmem:[%s1342_s1] sm:$0xff]   ;;  %v31_v3 = vld [vmem:[%s1341_s0 + $0x8] sm:$0xff]  ;;  %vm93_vm0 = vcmask 130048   ;;  %v32_v4 = vld [vmem:[%s1341_s0 + $0x10] sm:$0xff] }
   0x4   :  { %v30_v2 = vld [vmem:[%s1341_s0] sm:$0xff]  ;;  %894 = vmatprep.subr.bf16.mxu0 %v980_v1  ;;  %v33_v6 = vld [vmem:[%s1341_s0 + $0x18] sm:$0xff]  ;;  %v35_v8 = vld [vmem:[%s1341_s0 + $0x28] sm:$0xff] }
   0x5   :  { %v62_v5 = vpack.c.bf16 %v31_v3, %v30_v2  ;;  %v34_v7 = vld [vmem:[%s1341_s0 + $0x20] sm:$0xff]  ;;  %895 = vmatpush3.bf16.msra.mxu0 %v980_v1  ;;  %v63_v9 = vpack.c.bf16 %v33_v6, %v32_v4  ;;  %v36_v11 = vld [vmem:[%s1341_s0 + $0x30] sm:$0xff]  ;;  %v37_v12 = vld [vmem:[%s1341_s0 + $0x38] sm:$0xff] }
   0x6   :  { %v64_v10 = vpack.c.bf16 %v35_v8, %v34_v7  ;;  %v38_v13 = vld [vmem:[%s1341_s0 + $0x40] sm:$0xff]  ;;  %v39_v14 = vld [vmem:[%s1341_s0 + $0x48] sm:$0xff]  ;;  %v65_v15 = vpack.c.bf16 %v37_v12, %v36_v11  ;;  %v40_v19 = vld [vmem:[%s1341_s0 + $0x50] sm:$0xff] }
   0x7   :  { %896 = vmatprep.mubr.msk.bf16.mxu0 %vm93_vm0, %v62_v5  ;;  %v66_v16 = vpack.c.bf16 %v39_v14, %v38_v13  ;;  %v981_v17 = vld [vmem:[%s1344_s3] sm:$0xff]   ;;  %v982_v18 = vld [vmem:[%s1344_s3 + $0x8] sm:$0xff]   ;;  %v41_v20 = vld [vmem:[%s1341_s0 + $0x58] sm:$0xff] }
   0x8   :  { %897 = vmatmul.mubr.msk.bf16.vlgmr.msra.gmra.mrb[0].mxu0 %vm93_vm0, %v63_v9  ;;  %928 = vmatprep.subr.bf16.mxu1 %v981_v17 }
   0x9   :  { %900 = vmatprep.mubr.msk.bf16.mxu0 %vm93_vm0, %v64_v10  ;;  %929 = vmatpush3.bf16.msra.mxu1 %v981_v17 }
  0x10   :  { %901 = vmatmul.mubr.msk.bf16.gmra.mrb[4].mxu0 %vm93_vm0, %v65_v15 }
  0x11   :  { %904 = vmatprep.mubr.msk.bf16.mxu0 %vm93_vm0, %v66_v16 }
  0x12   :  { %14 = vsyncpa [#allocation4], 0  ;;  %v42_v21 = vld [vmem:[%s1341_s0 + $0x60] sm:$0xff]  ;;  %v43_v22 = vld [vmem:[%s1341_s0 + $0x68] sm:$0xff]  ;;  %930 = vmatprep.subr.bf16.mxu1 %v982_v18  ;;  %v67_v23 = vpack.c.bf16 %v41_v20, %v40_v19  ;;  %vm390_vm1 = vcmask 523264   ;;  %vm659_vm2 = vcmask 261120  }
  0x13   :  { %v68_v24 = vpack.c.bf16 %v43_v22, %v42_v21  ;;  %931 = vmatpush3.bf16.msra.mxu1 %v982_v18  ;;  %v44_v25 = vld [vmem:[%s1341_s0 + $0x70] sm:$0xff]  ;;  %v45_v26 = vld [vmem:[%s1341_s0 + $0x78] sm:$0xff]  ;;  %v46_v27 = vld [vmem:[%s1341_s0 + $0x80] sm:$0xff] }
  0x14   :  { %v47_v28 = vld [vmem:[%s1341_s0 + $0x88] sm:$0xff]  ;;  %v69_v29 = vpack.c.bf16 %v45_v26, %v44_v25  ;;  %v48_v31 = vld [vmem:[%s1341_s0 + $0x90] sm:$0xff]  ;;  %v49_v32 = vld [vmem:[%s1341_s0 + $0x98] sm:$0xff] }
  0x15   :  { %v70_v30 = vpack.c.bf16 %v47_v28, %v46_v27  ;;  %v50_v33 = vld [vmem:[%s1341_s0 + $0xa0] sm:$0xff]  ;;  %v51_v34 = vld [vmem:[%s1341_s0 + $0xa8] sm:$0xff]  ;;  %v71_v35 = vpack.c.bf16 %v49_v32, %v48_v31  ;;  %v52_v37 = vld [vmem:[%s1341_s0 + $0xb0] sm:$0xff] }
  0x16   :  { %v72_v36 = vpack.c.bf16 %v51_v34, %v50_v33  ;;  %v53_v38 = vld [vmem:[%s1341_s0 + $0xb8] sm:$0xff]  ;;  %v54_v39 = vld [vmem:[%s1341_s0 + $0xc0] sm:$0xff]  ;;  %v55_v40 = vld [vmem:[%s1341_s0 + $0xc8] sm:$0xff] }
  0x17   :  { %v73_v41 = vpack.c.bf16 %v53_v38, %v52_v37  ;;  %v74_v42 = vpack.c.bf16 %v55_v40, %v54_v39  ;;  %v56_v43 = vld [vmem:[%s1341_s0 + $0xd0] sm:$0xff]  ;;  %v57_v44 = vld [vmem:[%s1341_s0 + $0xd8] sm:$0xff]  ;;  %v58_v45 = vld [vmem:[%s1341_s0 + $0xe0] sm:$0xff] }
  0x18   :  { %905 = vmatmul.mubr.msk.bf16.gmra.mrb[8].mxu0 %vm93_vm0, %v67_v23  ;;  %v59_v46 = vld [vmem:[%s1341_s0 + $0xe8] sm:$0xff]  ;;  %v75_v47 = vpack.c.bf16 %v57_v44, %v56_v43  ;;  %v60_v49 = vld [vmem:[%s1341_s0 + $0xf0] sm:$0xff]  ;;  %v61_v50 = vld [vmem:[%s1341_s0 + $0xf8] sm:$0xff] }
  0x19   :  { %908 = vmatprep.mubr.msk.bf16.mxu0 %vm93_vm0, %v68_v24  ;;  %v76_v48 = vpack.c.bf16 %v59_v46, %v58_v45  ;;  %v77_v51 = vpack.c.bf16 %v61_v50, %v60_v49  ;;  %v983_v52 = vld [vmem:[%s1344_s3 + $0x10] sm:$0xff]   ;;  %v984_v53 = vld [vmem:[%s1344_s3 + $0x18] sm:$0xff]   ;;  %v1193_v54 = vld [vmem:[%s1343_s2] ss:$0 sm:$0xff] }
  0x1a   :  { %932 = vmatprep.subr.bf16.mxu1 %v983_v52 }
  0x1b   :  { %933 = vmatpush3.bf16.msra.mxu1 %v983_v52 }
  0x1c   :  { %934 = vmatprep.subr.bf16.mxu1 %v984_v53 }
  0x1f   :  { %935 = vmatpush3.bf16.msra.mxu1 %v984_v53 }
  0x20   :  { %909 = vmatmul.mubr.msk.bf16.gmra.mrb[12].mxu0 %vm93_vm0, %v69_v29 }
  0x21   :  { %912 = vmatprep.mubr.msk.bf16.mxu0 %vm93_vm0, %v70_v30 }
  0x28   :  { %913 = vmatmul.mubr.msk.bf16.gmra.mrb[16].mxu0 %vm93_vm0, %v71_v35 }
  0x29   :  { %916 = vmatprep.mubr.msk.bf16.mxu0 %vm93_vm0, %v72_v36 }
  0x30   :  { %917 = vmatmul.mubr.msk.bf16.gmra.mrb[20].mxu0 %vm93_vm0, %v73_v41 }
  0x31   :  { %920 = vmatprep.mubr.msk.bf16.mxu0 %vm93_vm0, %v74_v42 }
  0x38   :  { %921 = vmatmul.mubr.msk.bf16.gmra.mrb[24].mxu0 %vm93_vm0, %v75_v47 }
  0x39   :  { %924 = vmatprep.mubr.msk.bf16.mxu0 %vm93_vm0, %v76_v48 }
  0x40   :  { %925 = vmatmul.mubr.msk.bf16.gmra.mrb[28].mxu0 %vm93_vm0, %v77_v51 }
  0xdb   :  { %v898_v55 = vpop.f32.mrb[0].mxu0 }
  0xdc   :  { %v185_v56 = vadd.f32 %v898_v55, %v1193_v54  ;;  %v176_v57 = vpop.f32.mrb[1].mxu0 }
  0xdd   :  { %v177_v58 = vadd.f32 %v1193_v54, %v176_v57  ;;  %v899_v59 = vpop.f32.mrb[2].mxu0 }
  0xde   :  { %v188_v60 = vadd.f32 %v899_v59, %v1193_v54  ;;  %v179_v61 = vpop.f32.mrb[3].mxu0  ;;  %v305_v63 = vmax.f32 %v185_v56, 0.0 }
  0xdf   :  { %v180_v62 = vadd.f32 %v1193_v54, %v179_v61  ;;  %v303_v1 = vmax.f32 %v177_v58, 0.0 }
  0xe0   :  { %v306_v0 = vmax.f32 %v188_v60, 0.0 }
  0xe1   :  { %v304_v2 = vmax.f32 %v180_v62, 0.0 }
  0xe2   :  { %v336_v3 = vpack.c.bf16 %v306_v0, %v305_v63 }
  0xe3   :  { %v902_v4 = vpop.f32.mrb[4].mxu0  ;;  %v335_v5 = vpack.c.bf16 %v304_v2, %v303_v1 }
  0xe4   :  { %v201_v6 = vadd.f32 %v902_v4, %v1193_v54  ;;  %v192_v7 = vpop.f32.mrb[5].mxu0 }
  0xe5   :  { %v193_v8 = vadd.f32 %v1193_v54, %v192_v7  ;;  %v903_v9 = vpop.f32.mrb[6].mxu0  ;;  %936 = vmatprep.mubr.msk.bf16.mxu1 %vm390_vm1, %v335_v5 }
  0xe6   :  { %v204_v10 = vadd.f32 %v903_v9, %v1193_v54  ;;  %v195_v11 = vpop.f32.mrb[7].mxu0  ;;  %937 = vmatmul.mubr.msk.bf16.vlgmr.msra.gmra.mrb[0].mxu1 %vm390_vm1, %v336_v3  ;;  %v309_v13 = vmax.f32 %v201_v6, 0.0 }
  0xe7   :  { %v196_v12 = vadd.f32 %v1193_v54, %v195_v11  ;;  %v307_v15 = vmax.f32 %v193_v8, 0.0 }
  0xe8   :  { %v310_v14 = vmax.f32 %v204_v10, 0.0 }
  0xe9   :  { %v308_v16 = vmax.f32 %v196_v12, 0.0 }
  0xea   :  { %v338_v17 = vpack.c.bf16 %v310_v14, %v309_v13 }
  0xeb   :  { %v337_v18 = vpack.c.bf16 %v308_v16, %v307_v15  ;;  %v906_v19 = vpop.f32.mrb[8].mxu0 }
  0xec   :  { %v217_v20 = vadd.f32 %v906_v19, %v1193_v54  ;;  %v208_v21 = vpop.f32.mrb[9].mxu0 }
  0xed   :  { %v209_v22 = vadd.f32 %v1193_v54, %v208_v21  ;;  %v907_v23 = vpop.f32.mrb[10].mxu0  ;;  %940 = vmatprep.mubr.msk.bf16.mxu1 %vm390_vm1, %v337_v18 }
  0xee   :  { %v220_v24 = vadd.f32 %v907_v23, %v1193_v54  ;;  %v211_v25 = vpop.f32.mrb[11].mxu0  ;;  %941 = vmatmul.mubr.msk.bf16.gmra.mrb[4].mxu1 %vm390_vm1, %v338_v17  ;;  %v313_v27 = vmax.f32 %v217_v20, 0.0 }
  0xef   :  { %v212_v26 = vadd.f32 %v1193_v54, %v211_v25  ;;  %v311_v29 = vmax.f32 %v209_v22, 0.0 }
  0xf0   :  { %v314_v28 = vmax.f32 %v220_v24, 0.0 }
  0xf1   :  { %v312_v30 = vmax.f32 %v212_v26, 0.0 }
  0xf2   :  { %v340_v31 = vpack.c.bf16 %v314_v28, %v313_v27 }
  0xf3   :  { %v339_v32 = vpack.c.bf16 %v312_v30, %v311_v29  ;;  %v910_v33 = vpop.f32.mrb[12].mxu0 }
  0xf4   :  { %v233_v34 = vadd.f32 %v910_v33, %v1193_v54  ;;  %v224_v35 = vpop.f32.mrb[13].mxu0 }
  0xf5   :  { %v225_v36 = vadd.f32 %v1193_v54, %v224_v35  ;;  %v911_v37 = vpop.f32.mrb[14].mxu0  ;;  %944 = vmatprep.mubr.msk.bf16.mxu1 %vm390_vm1, %v339_v32 }
  0xf6   :  { %v236_v38 = vadd.f32 %v911_v37, %v1193_v54  ;;  %v227_v39 = vpop.f32.mrb[15].mxu0  ;;  %945 = vmatmul.mubr.msk.bf16.gmra.mrb[8].mxu1 %vm390_vm1, %v340_v31  ;;  %v317_v41 = vmax.f32 %v233_v34, 0.0 }
  0xf7   :  { %v228_v40 = vadd.f32 %v1193_v54, %v227_v39  ;;  %v315_v43 = vmax.f32 %v225_v36, 0.0 }
  0xf8   :  { %v318_v42 = vmax.f32 %v236_v38, 0.0 }
  0xf9   :  { %v316_v44 = vmax.f32 %v228_v40, 0.0  ;;  %v1246_v40 = vld [vmem:[%s1346_s5] sm:$0x1] }
  0xfa   :  { %v342_v45 = vpack.c.bf16 %v318_v42, %v317_v41  ;;  %892 = vmatprep.mubr.msk.bf16.mxu0 %vm659_vm2, %v1246_v40  ;;  %v649_v41 = vld [vmem:[#allocation2] sm:$0x1]  ;;  %v1017_v42 = vmov 0  }
  0xfb   :  { %v341_v46 = vpack.c.bf16 %v316_v44, %v315_v43  ;;  %v914_v47 = vpop.f32.mrb[16].mxu0  ;;  %979 = vset.pattern.permute.xlu0 %v1017_v42 }
  0xfc   :  { %v249_v48 = vadd.f32 %v914_v47, %v1193_v54  ;;  %v240_v49 = vpop.f32.mrb[17].mxu0  ;;  %652 = vperm.xlu0 %979, %v649_v41  }
  0xfd   :  { %v241_v50 = vadd.f32 %v1193_v54, %v240_v49  ;;  %v915_v51 = vpop.f32.mrb[18].mxu0  ;;  %948 = vmatprep.mubr.msk.bf16.mxu1 %vm390_vm1, %v341_v46 }
  0xfe   :  { %v252_v52 = vadd.f32 %v915_v51, %v1193_v54  ;;  %v243_v53 = vpop.f32.mrb[19].mxu0  ;;  %949 = vmatmul.mubr.msk.bf16.gmra.mrb[12].mxu1 %vm390_vm1, %v342_v45  ;;  %v321_v56 = vmax.f32 %v249_v48, 0.0 }
  0xff   :  { %v244_v55 = vadd.f32 %v1193_v54, %v243_v53  ;;  %v319_v58 = vmax.f32 %v241_v50, 0.0 }
 0x100   :  { %v322_v57 = vmax.f32 %v252_v52, 0.0 }
 0x101   :  { %v320_v59 = vmax.f32 %v244_v55, 0.0 }
 0x102   :  { %v344_v60 = vpack.c.bf16 %v322_v57, %v321_v56 }
 0x103   :  { %v343_v61 = vpack.c.bf16 %v320_v59, %v319_v58  ;;  %v918_v62 = vpop.f32.mrb[20].mxu0 }
 0x104   :  { %v265_v63 = vadd.f32 %v918_v62, %v1193_v54  ;;  %v256_v0 = vpop.f32.mrb[21].mxu0 }
 0x105   :  { %v257_v1 = vadd.f32 %v1193_v54, %v256_v0  ;;  %952 = vmatprep.mubr.msk.bf16.mxu1 %vm390_vm1, %v343_v61  ;;  %v919_v2 = vpop.f32.mrb[22].mxu0 }
 0x106   :  { %v325_v3 = vmax.f32 %v265_v63, 0.0  ;;  %v268_v4 = vadd.f32 %v919_v2, %v1193_v54  ;;  %953 = vmatmul.mubr.msk.bf16.gmra.mrb[16].mxu1 %vm390_vm1, %v344_v60  ;;  %v259_v5 = vpop.f32.mrb[23].mxu0 }
 0x107   :  { %v323_v6 = vmax.f32 %v257_v1, 0.0  ;;  %v260_v7 = vadd.f32 %v1193_v54, %v259_v5 }
 0x108   :  { %v326_v8 = vmax.f32 %v268_v4, 0.0 }
 0x109   :  { %v324_v9 = vmax.f32 %v260_v7, 0.0 }
 0x10a   :  { %v346_v10 = vpack.c.bf16 %v326_v8, %v325_v3 }
 0x10b   :  { %v345_v11 = vpack.c.bf16 %v324_v9, %v323_v6  ;;  %v922_v12 = vpop.f32.mrb[24].mxu0 }
 0x10c   :  { %v281_v13 = vadd.f32 %v922_v12, %v1193_v54  ;;  %v272_v14 = vpop.f32.mrb[25].mxu0 }
 0x10d   :  { %956 = vmatprep.mubr.msk.bf16.mxu1 %vm390_vm1, %v345_v11  ;;  %v273_v15 = vadd.f32 %v1193_v54, %v272_v14  ;;  %v923_v16 = vpop.f32.mrb[26].mxu0 }
 0x10e   :  { %957 = vmatmul.mubr.msk.bf16.gmra.mrb[20].mxu1 %vm390_vm1, %v346_v10  ;;  %v329_v17 = vmax.f32 %v281_v13, 0.0  ;;  %v284_v18 = vadd.f32 %v923_v16, %v1193_v54  ;;  %v275_v19 = vpop.f32.mrb[27].mxu0 }
 0x10f   :  { %v327_v20 = vmax.f32 %v273_v15, 0.0  ;;  %v276_v21 = vadd.f32 %v1193_v54, %v275_v19 }
 0x110   :  { %v330_v22 = vmax.f32 %v284_v18, 0.0 }
 0x111   :  { %v328_v23 = vmax.f32 %v276_v21, 0.0 }
 0x112   :  { %v348_v24 = vpack.c.bf16 %v330_v22, %v329_v17 }
 0x113   :  { %v347_v25 = vpack.c.bf16 %v328_v23, %v327_v20  ;;  %v926_v26 = vpop.f32.mrb[28].mxu0 }
 0x114   :  { %v297_v27 = vadd.f32 %v926_v26, %v1193_v54  ;;  %v288_v28 = vpop.f32.mrb[29].mxu0 }
 0x115   :  { %960 = vmatprep.mubr.msk.bf16.mxu1 %vm390_vm1, %v347_v25  ;;  %v289_v29 = vadd.f32 %v1193_v54, %v288_v28  ;;  %v927_v30 = vpop.f32.mrb[30].mxu0 }
 0x116   :  { %961 = vmatmul.mubr.msk.bf16.gmra.mrb[24].mxu1 %vm390_vm1, %v348_v24  ;;  %v333_v31 = vmax.f32 %v297_v27, 0.0  ;;  %v300_v32 = vadd.f32 %v927_v30, %v1193_v54  ;;  %v291_v33 = vpop.f32.mrb[31].mxu0 }
 0x117   :  { %v331_v34 = vmax.f32 %v289_v29, 0.0  ;;  %v292_v35 = vadd.f32 %v1193_v54, %v291_v33  ;;  %v1253_v54 = vld [vmem:[%s1345_s4] ss:$0 sm:$0xff]  ;;  %s1019_s4 = smov [#allocation3]  }
 0x118   :  { %v334_v36 = vmax.f32 %v300_v32, 0.0  ;;  %s791_s5 = sshll.u32 %s1019_s4, 4  ;;  %s792_s5 = int_to_ptr.vmem [resolvable:$true] %s791_s5 }
 0x119   :  { %v332_v37 = vmax.f32 %v292_v35, 0.0  ;;  %s993_s28 = scalar_lea.vmem %s792_s5, 32  ;;  %p998_p1 = scmp.lt.s32.totalorder %s792_s5, %s792_s5 }
 0x11a   :  { %v350_v38 = vpack.c.bf16 %v334_v36, %v333_v31  ;;  %p994_p0 = scmp.ne.s32.totalorder %s792_s5, %s993_s28  ;;  %p999_p2 = scmp.lt.s32.totalorder %s993_s28, %s993_s28 }
 0x11b   :  { %v349_v39 = vpack.c.bf16 %v332_v37, %v331_v34 }
 0x11c   :  { %p1000_p3 = por %p999_p2, %p998_p1 }
 0x11d   :  { %964 = vmatprep.mubr.msk.bf16.mxu1 %vm390_vm1, %v349_v39 }
 0x11e   :  { %965 = vmatmul.mubr.msk.bf16.gmra.mrb[28].mxu1 %vm390_vm1, %v350_v38  ;;  %p1001_p4 = pnand %p1000_p3, %p994_p0 }
 0x1b9   :  { %v938_v43 = vpop.f32.mrb[0].mxu1 }
 0x1ba   :  { %v482_v44 = vadd.f32 %v938_v43, %v1253_v54  ;;  %v473_v45 = vpop.f32.mrb[1].mxu1 }
 0x1bb   :  { %v474_v46 = vadd.f32 %v1253_v54, %v473_v45  ;;  %v939_v47 = vpop.f32.mrb[2].mxu1 }
 0x1bc   :  { %v485_v48 = vadd.f32 %v939_v47, %v1253_v54  ;;  %v476_v49 = vpop.f32.mrb[3].mxu1  ;;  %v602_v51 = vmax.f32 %v482_v44, 0.0 }
 0x1bd   :  { %v477_v50 = vadd.f32 %v1253_v54, %v476_v49  ;;  %v600_v53 = vmax.f32 %v474_v46, 0.0 }
 0x1be   :  { %v603_v52 = vmax.f32 %v485_v48, 0.0 }
 0x1bf   :  { %v601_v55 = vmax.f32 %v477_v50, 0.0 }
 0x1c0   :  { %v1259_v56 = vpack.c.bf16 %v603_v52, %v602_v51 }
 0x1c1   :  { %v1261_v57 = vpack.c.bf16 %v601_v55, %v600_v53  ;;  %v942_v58 = vpop.f32.mrb[4].mxu1 }
 0x1c2   :  { %v498_v59 = vadd.f32 %v942_v58, %v1253_v54  ;;  %v489_v60 = vpop.f32.mrb[5].mxu1 }
 0x1c3   :  { %v490_v61 = vadd.f32 %v1253_v54, %v489_v60  ;;  %v943_v62 = vpop.f32.mrb[6].mxu1 }
 0x1c4   :  { %v501_v63 = vadd.f32 %v943_v62, %v1253_v54  ;;  %v492_v0 = vpop.f32.mrb[7].mxu1  ;;  %v606_v2 = vmax.f32 %v498_v59, 0.0  ;;  %v664_v59 = vsel %vm659_vm2, %v1261_v57, 0  ;;  %v667_v57 = vsel %vm659_vm2, %v1259_v56, 0 }
 0x1c5   :  { %v493_v1 = vadd.f32 %v1253_v54, %v492_v0  ;;  %v604_v4 = vmax.f32 %v490_v61, 0.0 }
 0x1c6   :  { %v607_v3 = vmax.f32 %v501_v63, 0.0 }
 0x1c7   :  { %v605_v5 = vmax.f32 %v493_v1, 0.0 }
 0x1c8   :  { %v1267_v6 = vpack.c.bf16 %v607_v3, %v606_v2 }
 0x1c9   :  { %v1269_v7 = vpack.c.bf16 %v605_v5, %v604_v4  ;;  %v946_v8 = vpop.f32.mrb[8].mxu1 }
 0x1ca   :  { %v514_v9 = vadd.f32 %v946_v8, %v1253_v54  ;;  %v505_v10 = vpop.f32.mrb[9].mxu1 }
 0x1cb   :  { %v506_v11 = vadd.f32 %v1253_v54, %v505_v10  ;;  %v947_v12 = vpop.f32.mrb[10].mxu1 }
 0x1cc   :  { %v517_v13 = vadd.f32 %v947_v12, %v1253_v54  ;;  %v508_v14 = vpop.f32.mrb[11].mxu1  ;;  %v610_v16 = vmax.f32 %v514_v9, 0.0 }
 0x1cd   :  { %v509_v15 = vadd.f32 %v1253_v54, %v508_v14  ;;  %v608_v18 = vmax.f32 %v506_v11, 0.0 }
 0x1ce   :  { %v611_v17 = vmax.f32 %v517_v13, 0.0 }
 0x1cf   :  { %v609_v19 = vmax.f32 %v509_v15, 0.0 }
 0x1d0   :  { %v1275_v20 = vpack.c.bf16 %v611_v17, %v610_v16 }
 0x1d1   :  { %v1277_v21 = vpack.c.bf16 %v609_v19, %v608_v18  ;;  %v950_v22 = vpop.f32.mrb[12].mxu1 }
 0x1d2   :  { %v530_v23 = vadd.f32 %v950_v22, %v1253_v54  ;;  %v521_v24 = vpop.f32.mrb[13].mxu1 }
 0x1d3   :  { %v522_v25 = vadd.f32 %v1253_v54, %v521_v24  ;;  %v951_v26 = vpop.f32.mrb[14].mxu1 }
 0x1d4   :  { %v533_v27 = vadd.f32 %v951_v26, %v1253_v54  ;;  %v524_v28 = vpop.f32.mrb[15].mxu1  ;;  %v614_v30 = vmax.f32 %v530_v23, 0.0 }
 0x1d5   :  { %v525_v29 = vadd.f32 %v1253_v54, %v524_v28  ;;  %v612_v32 = vmax.f32 %v522_v25, 0.0  ;;  %v670_v25 = vsel %vm659_vm2, %v1269_v7, 0  ;;  %v673_v7 = vsel %vm659_vm2, %v1267_v6, 0 }
 0x1d6   :  { %v615_v31 = vmax.f32 %v533_v27, 0.0 }
 0x1d7   :  { %v613_v33 = vmax.f32 %v525_v29, 0.0 }
 0x1d8   :  { %v1283_v34 = vpack.c.bf16 %v615_v31, %v614_v30 }
 0x1d9   :  { %v1285_v35 = vpack.c.bf16 %v613_v33, %v612_v32  ;;  %v954_v36 = vpop.f32.mrb[16].mxu1 }
 0x1da   :  { %v546_v37 = vadd.f32 %v954_v36, %v1253_v54  ;;  %v537_v38 = vpop.f32.mrb[17].mxu1  ;;  %v685_v6 = vsel %vm659_vm2, %v1283_v34, 0 }
 0x1db   :  { %v538_v39 = vadd.f32 %v1253_v54, %v537_v38  ;;  %v955_v41 = vpop.f32.mrb[18].mxu1 }
 0x1dc   :  { %v549_v42 = vadd.f32 %v955_v41, %v1253_v54  ;;  %v540_v43 = vpop.f32.mrb[19].mxu1  ;;  %v618_v45 = vmax.f32 %v546_v37, 0.0  ;;  %v679_v41 = vsel %vm659_vm2, %v1275_v20, 0  ;;  %v653_v20 = vpop.permute.xlu0 %652 }
 0x1dd   :  { %v541_v44 = vadd.f32 %v1253_v54, %v540_v43  ;;  %v616_v47 = vmax.f32 %v538_v39, 0.0  ;;  %v676_v39 = vsel %vm659_vm2, %v1277_v21, 0  ;;  %v655_v21 = vlaneseq }
 0x1de   :  { %v619_v46 = vmax.f32 %v549_v42, 0.0 }
 0x1df   :  { %v617_v48 = vmax.f32 %v541_v44, 0.0  ;;  %v656_v42 = vshrl.u32 %v655_v21, 7  ;;  %vm782_vm3 = vcmp.lt.s32.totalorder %v655_v21, 256 }
 0x1e0   :  { %v642_v49 = vpack.c.bf16 %v619_v46, %v618_v45 }
 0x1e1   :  { %v641_v50 = vpack.c.bf16 %v617_v48, %v616_v47  ;;  %v958_v51 = vpop.f32.mrb[20].mxu1  ;;  %v657_v43 = vsub.s32 0, %v656_v42 }
 0x1e2   :  { %v562_v52 = vadd.f32 %v958_v51, %v1253_v54  ;;  %v553_v53 = vpop.f32.mrb[21].mxu1 }
 0x1e3   :  { %v554_v55 = vadd.f32 %v1253_v54, %v553_v53  ;;  %968 = vmatprep.subr.msk.bf16.mxu0 %vm659_vm2, %v641_v50  ;;  %v959_v58 = vpop.f32.mrb[22].mxu1  ;;  %v658_v44 = vrot.slane %v653_v20, %v657_v43 }
 0x1e4   :  { %v622_v60 = vmax.f32 %v562_v52, 0.0  ;;  %v565_v61 = vadd.f32 %v959_v58, %v1253_v54  ;;  %877 = vmatpush3.bf16.xpose.msra.mxu0 %v664_v59  ;;  %v556_v62 = vpop.f32.mrb[23].mxu1  ;;  %v1018_v59 = vmov 1966171168  }
 0x1e5   :  { %v620_v63 = vmax.f32 %v554_v55, 0.0  ;;  %v557_v0 = vadd.f32 %v1253_v54, %v556_v62  ;;  %969 = vmatprep.subr.msk.bf16.mxu0 %vm659_vm2, %v642_v49 }
 0x1e6   :  { %v623_v1 = vmax.f32 %v565_v61, 0.0 }
 0x1e7   :  { %v621_v2 = vmax.f32 %v557_v0, 0.0 }
 0x1e8   :  { %v644_v3 = vpack.c.bf16 %v623_v1, %v622_v60  ;;  %v766_v60 = vunpack.c.l.s4 %v1018_v59 }
 0x1e9   :  { %v643_v4 = vpack.c.bf16 %v621_v2, %v620_v63  ;;  %v962_v5 = vpop.f32.mrb[24].mxu1 }
 0x1ea   :  { %v578_v8 = vadd.f32 %v962_v5, %v1253_v54  ;;  %v569_v9 = vpop.f32.mrb[25].mxu1  ;;  %v767_v61 = vunpack.c.0.s8 %v766_v60 }
 0x1eb   :  { %v570_v10 = vadd.f32 %v1253_v54, %v569_v9  ;;  %v963_v11 = vpop.f32.mrb[26].mxu1 }
 0x1ec   :  { %879 = vmatpush3.bf16.xpose.msra.mxu0 %v667_v57  ;;  %v626_v12 = vmax.f32 %v578_v8, 0.0  ;;  %v581_v13 = vadd.f32 %v963_v11, %v1253_v54  ;;  %v572_v14 = vpop.f32.mrb[27].mxu1  ;;  %v770_v63 = vsub.s32 %v767_v61, %v656_v42 }
 0x1ed   :  { %970 = vmatprep.subr.msk.bf16.mxu0 %vm659_vm2, %v643_v4  ;;  %v624_v15 = vmax.f32 %v570_v10, 0.0  ;;  %v573_v16 = vadd.f32 %v1253_v54, %v572_v14 }
 0x1ee   :  { %v627_v17 = vmax.f32 %v581_v13, 0.0 }
 0x1ef   :  { %v625_v18 = vmax.f32 %v573_v16, 0.0 }
 0x1f0   :  { %v646_v19 = vpack.c.bf16 %v627_v17, %v626_v12 }
 0x1f1   :  { %v645_v22 = vpack.c.bf16 %v625_v18, %v624_v15  ;;  %v966_v23 = vpop.f32.mrb[28].mxu1 }
 0x1f2   :  { %v594_v56 = vadd.f32 %v966_v23, %v1253_v54  ;;  %v585_v24 = vpop.f32.mrb[29].mxu1 }
 0x1f3   :  { %v586_v26 = vadd.f32 %v1253_v54, %v585_v24  ;;  %v967_v27 = vpop.f32.mrb[30].mxu1 }
 0x1f4   :  { %881 = vmatpush3.bf16.xpose.msra.mxu0 %v670_v25  ;;  %v630_v28 = vmax.f32 %v594_v56, 0.0  ;;  %v597_v29 = vadd.f32 %v967_v27, %v1253_v54  ;;  %v588_v30 = vpop.f32.mrb[31].mxu1 }
 0x1f5   :  { %971 = vmatprep.subr.msk.bf16.mxu0 %vm659_vm2, %v644_v3  ;;  %v628_v31 = vmax.f32 %v586_v26, 0.0  ;;  %v589_v32 = vadd.f32 %v1253_v54, %v588_v30  ;;  %v682_v54 = vsel %vm659_vm2, %v1285_v35, 0 }
 0x1f6   :  { %v631_v33 = vmax.f32 %v597_v29, 0.0 }
 0x1f7   :  { %v629_v36 = vmax.f32 %v589_v32, 0.0 }
 0x1f8   :  { %v648_v37 = vpack.c.bf16 %v631_v33, %v630_v28 }
 0x1f9   :  { %v647_v38 = vpack.c.bf16 %v629_v36, %v628_v31 }
 0x1fc   :  { %883 = vmatpush3.bf16.xpose.msra.mxu0 %v673_v7 }
 0x1fd   :  { %972 = vmatprep.subr.msk.bf16.mxu0 %vm659_vm2, %v645_v22 }
 0x204   :  { %885 = vmatpush3.bf16.xpose.msra.mxu0 %v676_v39 }
 0x205   :  { %973 = vmatprep.subr.msk.bf16.mxu0 %vm659_vm2, %v646_v19 }
 0x20c   :  { %887 = vmatpush3.bf16.xpose.msra.mxu0 %v679_v41 }
 0x20d   :  { %974 = vmatprep.subr.msk.bf16.mxu0 %vm659_vm2, %v647_v38 }
 0x214   :  { %889 = vmatpush3.bf16.xpose.msra.mxu0 %v682_v54 }
 0x215   :  { %975 = vmatprep.subr.msk.bf16.mxu0 %vm659_vm2, %v648_v37 }
 0x21c   :  { %891 = vmatpush3.bf16.xpose.msra.mxu0 %v685_v6 }
 0x223   :  { %893 = vmatmul.mubr.msk.bf16.vlgmr.msra.gmra.mrb[32].mxu0 %vm659_vm2, %v1246_v40 }
 0x2f6   :  { %v745_v45 = vpop.f32.mrb[32].mxu0 }
 0x2f7   :  { %v746_v46 = vadd.f32 %v745_v45, %v658_v44  ;;  %v747_v47 = vpop.f32.mrb[33].mxu0 }
 0x2f8   :  { %v748_v48 = vadd.f32 %v747_v47, %v658_v44  ;;  %v749_v35 = vpop.f32.mrb[34].mxu0 }
 0x2f9   :  { %v752_v49 = vsub.f32 0.0, %v746_v46  ;;  %v750_v50 = vpop.f32.mrb[35].mxu0 }
 0x2fa   :  { %v753_v51 = vsub.f32 0.0, %v748_v48 }
 0x2fb   :  { %v754_v52 = vmul.f32 1.442695, %v752_v49 }
 0x2fc   :  { %v756_v53 = vmul.f32 1.442695, %v753_v51 }
 0x2fd   :  { %985 = vpow2.f32 %v754_v52 }
 0x2fe   :  { %987 = vpow2.f32 %v756_v53 }
 0x307   :  { %v986_v34 = vpop.eup %985 }
 0x308   :  { %v988_v55 = vpop.eup %987  ;;  %v758_v40 = vadd.f32 1.0, %v986_v34 }
 0x309   :  { %v759_v58 = vadd.f32 1.0, %v988_v55 }
 0x30a   :  { %989 = vrcp.f32 %v758_v40 }
 0x30b   :  { %991 = vrcp.f32 %v759_v58 }
 0x314   :  { %v990_v62 = vpop.eup %989 }
 0x315   :  { %v992_v0 = vpop.eup %991 }
 0x316   :  { %v764_v1 = vcombine.low %v990_v62, %v992_v0 }
 0x318   :  { %v771_v2 = vrot.slane %v764_v1, %v770_v63 }
 0x31a   :  { %v778_v3 = vrot.slane %v771_v2, %v770_v63 }
 0x31c   :  { %784 = vst.msk [vmem:[#allocation3] sm:$0x3] %vm782_vm3, %v778_v3 }
 0x31d   :  { %1004 = shalt.err (!%p1001_p4)
}
 0x31e   :  { %s1005_s8 = scalar_lea.hbm %s1348_s7, 32 }
 0x31f   :  { %p1006_p5 = scmp.ne.s32.totalorder %s1348_s7, %s1005_s8  ;;  %p1009_p6 = scmp.lt.u32.totalorder %s1005_s8, %s1348_s7 }
 0x321   :  { %p1011_p7 = pnand %p1009_p6, %p1006_p5 }
 0x323   :  { %1014 = shalt.err (!%p1011_p7)
}
 0x324   :  { %794 = dma.vmem_to_hbm [thread:$0]  %s792_s5, 32, %s1348_s7, [#allocation4]  }
 0x325   :  { %1015 = dma.done.wait [#allocation4], 32  }
 0x326   :  { %1016 = vsyncadd [#allocation4], 4294967264 }
 0x327   :  { %798 = vsyncpa [#allocation4], 1 }

</bundles_post_ra>
